<compile_context>
chip_gen: v7x
topology: tpu7x:2x2x1
jax: 0.10.0
libtpu: 0.0.40
codegen_flags: <defaults>
</compile_context>

<pallas_src>
import functools

import jax
import jax.numpy as jnp
from jax.experimental import pallas as pl
from jax.experimental.pallas import tpu as pltpu


def _round_up(x, m):
    return ((x + m - 1) // m) * m


# ----------------------------- Pallas kernel -------------------------------
def rgcl_clip_kernel(
    # inputs
    img_ref,         # [TB, TK]      bf16  flattened-pixel tile (K-streamed)
    tok_ref,         # [TB, S, Dt]   f32   token embeddings
    mask_ref,        # [TB, S]       f32   mask pre-scaled by 1/sum(mask)
    w_imgproj_ref,   # [TK, D]       bf16  (K-streamed)
    w_txtproj_ref,   # [Dt, D]       bf16
    w_fus_img_ref,   # [D, D]        bf16  top half of concat fusion weight
    w_fus_txt_ref,   # [D, D]        bf16  bottom half
    b_fus_ref,       # [1, D]        f32
    w_c1_ref, b_c1_ref,   # [D, 512] bf16, [1, 512] f32
    w_c2_ref, b_c2_ref,   # [512, 256] bf16, [1, 256] f32
    w_c3_ref, b_c3_ref,   # [256, L] bf16, [1, L] f32
    # outputs
    logits_ref,          # [TB, L]  f32
    image_embeds_ref,    # [TB, D]  f32
    text_embeds_ref,     # [TB, D]  f32
    fused_ref,           # [TB, D]  f32
    # scratch
    acc_ref,             # [TB, D]  f32  image-projection accumulator
):
    f32 = jnp.float32
    k = pl.program_id(1)

    # ---- image tower stand-in: K-streamed linear projection of flattened
    # pixels, accumulated in f32 scratch across the K (reduction) grid axis.
    # TODO(synk): the full pretrained CLIP vision transformer is not
    # reproduced (no checkpoint); projection + L2 normalization only.
    @pl.when(k == 0)
    def _():
        acc_ref[...] = jnp.zeros_like(acc_ref)

    acc_ref[...] += jnp.dot(img_ref[...], w_imgproj_ref[...],
                            preferred_element_type=f32)

    # ---- everything downstream runs only on the last K step.
    @pl.when(k == pl.num_programs(1) - 1)
    def _():
        eps = 1e-12

        # L2-normalized image embedding (rsqrt -> EUP slot, no 1/0 hazard).
        img_proj = acc_ref[...]
        inv_i = jax.lax.rsqrt(
            jnp.sum(img_proj * img_proj, axis=-1, keepdims=True) + eps)
        image_embeds = img_proj * inv_i

        # Text tower stand-in: masked-mean pooling (1/sum(mask) already folded
        # into mask in glue), linear projection, L2 norm.
        # TODO(synk): real CLIP pools the EOS-token hidden state.
        tok = tok_ref[...]
        mask = mask_ref[...]
        pooled = jnp.sum(tok * mask[:, :, None], axis=1)          # [TB, Dt]
        txt_proj = jnp.dot(pooled, w_txtproj_ref[...].astype(f32),
                           preferred_element_type=f32)
        inv_t = jax.lax.rsqrt(
            jnp.sum(txt_proj * txt_proj, axis=-1, keepdims=True) + eps)
        text_embeds = txt_proj * inv_t

        # Fusion layer: Linear(2D -> D) over concat([img, txt], dim=1),
        # expressed as the algebraically-identical split-weight sum.
        # Dropout(0.3) -> identity (eval).
        fused = (jnp.dot(image_embeds, w_fus_img_ref[...].astype(f32),
                         preferred_element_type=f32)
                 + jnp.dot(text_embeds, w_fus_txt_ref[...].astype(f32),
                           preferred_element_type=f32)
                 + b_fus_ref[...])
        fused = jnp.maximum(fused, 0.0)

        # Classifier: Linear(D,512)+ReLU -> Linear(512,256)+ReLU -> Linear(256,L)
        h = jnp.dot(fused, w_c1_ref[...].astype(f32),
                    preferred_element_type=f32) + b_c1_ref[...]
        h = jnp.maximum(h, 0.0)
        h = jnp.dot(h, w_c2_ref[...].astype(f32),
                    preferred_element_type=f32) + b_c2_ref[...]
        h = jnp.maximum(h, 0.0)
        logits = jnp.dot(h, w_c3_ref[...].astype(f32),
                         preferred_element_type=f32) + b_c3_ref[...]

        logits_ref[...] = logits
        image_embeds_ref[...] = image_embeds
        text_embeds_ref[...] = text_embeds
        fused_ref[...] = fused


# ------------------------------ JAX wrapper --------------------------------
def init_params(key, *, img_feat, txt_hidden, embed_dim, vocab_size, num_labels):
    ks = jax.random.split(key, 10)
    scale = 0.02

    def w(k, shape):
        return scale * jax.random.normal(k, shape, dtype=jnp.float32)

    return {
        "tok_emb_table": w(ks[0], (vocab_size, txt_hidden)),
        "w_imgproj": w(ks[1], (img_feat, embed_dim)),      # no bias (CLIP proj)
        "w_txtproj": w(ks[2], (txt_hidden, embed_dim)),    # no bias (CLIP proj)
        "w_fus_img": w(ks[3], (embed_dim, embed_dim)),
        "w_fus_txt": w(ks[4], (embed_dim, embed_dim)),
        "b_fus": jnp.zeros((1, embed_dim), jnp.float32),
        "w_c1": w(ks[5], (embed_dim, 512)),
        "b_c1": jnp.zeros((1, 512), jnp.float32),
        "w_c2": w(ks[6], (512, 256)),
        "b_c2": jnp.zeros((1, 256), jnp.float32),
        "w_c3": w(ks[7], (256, num_labels)),
        "b_c3": jnp.zeros((1, num_labels), jnp.float32),
    }


@functools.partial(jax.jit, static_argnames=("tb", "tk"))
def rgcl_clip_forward(pixel_values, input_ids, attention_mask, params,
                      tb=None, tk=None):
    f32, bf16 = jnp.float32, jnp.bfloat16

    B = pixel_values.shape[0]
    S = input_ids.shape[1]
    K = int(pixel_values.shape[1] * pixel_values.shape[2] * pixel_values.shape[3])
    Dt = params["tok_emb_table"].shape[1]
    D = params["w_imgproj"].shape[1]
    L = params["w_c3"].shape[1]

    # ---- padded / tiled sizes (lane-dense: last dims to multiples of 128).
    D_pad = _round_up(D, 128)
    Dt_pad = _round_up(Dt, 128)
    L_pad = _round_up(L, 128)

    if tb is None:                       # batch tile: 128 rows (>=8) per step
        tb = 128 if B >= 128 else _round_up(B, 8)
    B_pad = _round_up(B, tb)

    if tk is None:
        # K tile: multiple of 128, sized so double-buffered bf16 weight tiles
        # stay small even on v7x's 64 MiB VMEM (also fine on v5e/v6e, which
        # could afford 4096-8192; per-gen tuning via pltpu.get_tpu_info()).
        tk = min(2048, _round_up(K, 128))
    K_pad = _round_up(K, tk)

    # ---- glue: NCHW flatten, embedding gather, mask scaling (1/sum folded in).
    img_flat = pixel_values.reshape(B, -1).astype(f32)
    img_flat = jnp.pad(img_flat, ((0, B_pad - B), (0, K_pad - K))).astype(bf16)

    tok_emb = params["tok_emb_table"][input_ids].astype(f32)       # [B, S, Dt]
    tok_emb = jnp.pad(tok_emb, ((0, B_pad - B), (0, 0), (0, Dt_pad - Dt)))

    mask = attention_mask.astype(f32)
    mask = mask / jnp.maximum(jnp.sum(mask, axis=1, keepdims=True), 1.0)
    mask = jnp.pad(mask, ((0, B_pad - B), (0, 0)))

    # ---- weights: zero-pad feature dims (exact) and cast to bf16.
    def pad2(w_, r, c):
        return jnp.pad(w_, ((0, r - w_.shape[0]), (0, c - w_.shape[1])))

    w_imgproj = pad2(params["w_imgproj"], K_pad, D_pad).astype(bf16)
    w_txtproj = pad2(params["w_txtproj"], Dt_pad, D_pad).astype(bf16)
    w_fus_img = pad2(params["w_fus_img"], D_pad, D_pad).astype(bf16)
    w_fus_txt = pad2(params["w_fus_txt"], D_pad, D_pad).astype(bf16)
    b_fus = pad2(params["b_fus"], 1, D_pad).astype(f32)
    w_c1 = pad2(params["w_c1"], D_pad, 512).astype(bf16)
    b_c1 = params["b_c1"].astype(f32)
    w_c2 = params["w_c2"].astype(bf16)
    b_c2 = params["b_c2"].astype(f32)
    w_c3 = pad2(params["w_c3"], 256, L_pad).astype(bf16)
    b_c3 = pad2(params["b_c3"], 1, L_pad).astype(f32)

    grid = (B_pad // tb, K_pad // tk)

    in_specs = [
        pl.BlockSpec((tb, tk), lambda b, k: (b, k)),             # img_flat
        pl.BlockSpec((tb, S, Dt_pad), lambda b, k: (b, 0, 0)),   # tok_emb
        pl.BlockSpec((tb, S), lambda b, k: (b, 0)),              # mask
        pl.BlockSpec((tk, D_pad), lambda b, k: (k, 0)),          # w_imgproj
        pl.BlockSpec((Dt_pad, D_pad), lambda b, k: (0, 0)),      # w_txtproj
        pl.BlockSpec((D_pad, D_pad), lambda b, k: (0, 0)),       # w_fus_img
        pl.BlockSpec((D_pad, D_pad), lambda b, k: (0, 0)),       # w_fus_txt
        pl.BlockSpec((1, D_pad), lambda b, k: (0, 0)),           # b_fus
        pl.BlockSpec((D_pad, 512), lambda b, k: (0, 0)),         # w_c1
        pl.BlockSpec((1, 512), lambda b, k: (0, 0)),             # b_c1
        pl.BlockSpec((512, 256), lambda b, k: (0, 0)),           # w_c2
        pl.BlockSpec((1, 256), lambda b, k: (0, 0)),             # b_c2
        pl.BlockSpec((256, L_pad), lambda b, k: (0, 0)),         # w_c3
        pl.BlockSpec((1, L_pad), lambda b, k: (0, 0)),           # b_c3
    ]
    out_specs = (
        pl.BlockSpec((tb, L_pad), lambda b, k: (b, 0)),          # logits slab
        pl.BlockSpec((tb, D_pad), lambda b, k: (b, 0)),          # image_embeds
        pl.BlockSpec((tb, D_pad), lambda b, k: (b, 0)),          # text_embeds
        pl.BlockSpec((tb, D_pad), lambda b, k: (b, 0)),          # fused
    )
    out_shapes = (
        jax.ShapeDtypeStruct((B_pad, L_pad), f32),
        jax.ShapeDtypeStruct((B_pad, D_pad), f32),
        jax.ShapeDtypeStruct((B_pad, D_pad), f32),
        jax.ShapeDtypeStruct((B_pad, D_pad), f32),
    )

    # Advisory cost hint so XLA schedules the surrounding gather/reshape well.
    flops = 2 * B_pad * (K_pad * D_pad + Dt_pad * D_pad + 2 * D_pad * D_pad
                         + D_pad * 512 + 512 * 256 + 256 * L_pad)
    weight_bytes = sum(int(x.size) * x.dtype.itemsize for x in
                       (w_imgproj, w_txtproj, w_fus_img, w_fus_txt,
                        w_c1, w_c2, w_c3))
    act_bytes = (int(img_flat.size) * 2 + int(tok_emb.size) * 4
                 + int(mask.size) * 4 + 4 * B_pad * (L_pad + 3 * D_pad))
    cost = pl.CostEstimate(flops=flops, transcendentals=2 * B_pad,
                           bytes_accessed=weight_bytes + act_bytes)

    logits_p, img_p, txt_p, fus_p = pl.pallas_call(
        rgcl_clip_kernel,
        out_shape=out_shapes,
        grid_spec=pltpu.PrefetchScalarGridSpec(
            num_scalar_prefetch=0,
            grid=grid,
            in_specs=in_specs,
            out_specs=out_specs,
            scratch_shapes=[pltpu.VMEM((tb, D_pad), f32)],
        ),
        compiler_params=pltpu.CompilerParams(
            dimension_semantics=("parallel", "arbitrary"),
            vmem_limit_bytes=48 * 1024 * 1024,
        ),
        cost_estimate=cost,
    )(img_flat, tok_emb, mask, w_imgproj, w_txtproj, w_fus_img, w_fus_txt,
      b_fus, w_c1, b_c1, w_c2, b_c2, w_c3, b_c3)

    # Slice off batch / lane padding.
    return {
        "logits": logits_p[:B, :L],
        "image_embeds": img_p[:B, :D],
        "text_embeds": txt_p[:B, :D],
        "fused_embeds": fus_p[:B, :D],
    }


# --------------------------------- main -------------------------------------
if __name__ == "__main__":
    B, C, H, W = 2, 3, 16, 16          # pixel_values: NCHW
    S = 8                              # text sequence length
    Dt = 16                            # text token-embedding dim (stand-in)
    D = 32                             # projection_dim / embed_dim
    VOCAB = 64
    NUM_LABELS = 2

    key = jax.random.PRNGKey(0)
    k_px, k_ids, k_params = jax.random.split(key, 3)

    pixel_values = jax.random.normal(k_px, (B, C, H, W), dtype=jnp.float32)
    input_ids = jax.random.randint(k_ids, (B, S), 0, VOCAB, dtype=jnp.int32)
    # deterministic attention mask: first 6 tokens valid, last 2 padding
    attention_mask = jnp.concatenate(
        [jnp.ones((B, 6), jnp.int32), jnp.zeros((B, 2), jnp.int32)], axis=1)

    params = init_params(k_params, img_feat=C * H * W, txt_hidden=Dt,
                         embed_dim=D, vocab_size=VOCAB, num_labels=NUM_LABELS)

    # tk=256 so the toy K=768 exercises the 3-step K-accumulation pipeline.
    out = rgcl_clip_forward(pixel_values, input_ids, attention_mask, params,
                            tk=256)
    jax.block_until_ready(out)

    assert out["logits"].shape == (B, NUM_LABELS)
    assert out["image_embeds"].shape == (B, D)
    assert out["text_embeds"].shape == (B, D)
    assert out["fused_embeds"].shape == (B, D)
    for v in out.values():
        assert bool(jnp.all(jnp.isfinite(v)))
    print("KERNEL_OK")
</pallas_src>

<mosaic_0001>
module attributes {stable_mosaic.version = 11 : i64} {
  func.func @rgcl_clip_kernel(%arg0: i32, %arg1: i32, %arg2: memref<8x256xbf16, #tpu.memory_space<vmem>>, %arg3: memref<8x8x128xf32, #tpu.memory_space<vmem>>, %arg4: memref<8x8xf32, #tpu.memory_space<vmem>>, %arg5: memref<256x128xbf16, #tpu.memory_space<vmem>>, %arg6: memref<128x128xbf16, #tpu.memory_space<vmem>>, %arg7: memref<128x128xbf16, #tpu.memory_space<vmem>>, %arg8: memref<128x128xbf16, #tpu.memory_space<vmem>>, %arg9: memref<1x128xf32, #tpu.memory_space<vmem>>, %arg10: memref<128x512xbf16, #tpu.memory_space<vmem>>, %arg11: memref<1x512xf32, #tpu.memory_space<vmem>>, %arg12: memref<512x256xbf16, #tpu.memory_space<vmem>>, %arg13: memref<1x256xf32, #tpu.memory_space<vmem>>, %arg14: memref<256x128xbf16, #tpu.memory_space<vmem>>, %arg15: memref<1x128xf32, #tpu.memory_space<vmem>>, %arg16: memref<8x128xf32, #tpu.memory_space<vmem>>, %arg17: memref<8x128xf32, #tpu.memory_space<vmem>>, %arg18: memref<8x128xf32, #tpu.memory_space<vmem>>, %arg19: memref<8x128xf32, #tpu.memory_space<vmem>>, %arg20: memref<8x128xf32, #tpu.memory_space<vmem>>) attributes {dimension_semantics = [#tpu.dimension_semantics<parallel>, #tpu.dimension_semantics<arbitrary>], iteration_bounds = array<i64: 1, 3>, scalar_prefetch = 0 : i64, scratch_operands = 1 : i64, tpu.core_type = #tpu.core_type<tc>, window_params = [{transform_indices = @transform_0, window_bounds = array<i64: 8, 256>}, {transform_indices = @transform_1, window_bounds = array<i64: 8, 8, 128>}, {transform_indices = @transform_2, window_bounds = array<i64: 8, 8>}, {transform_indices = @transform_3, window_bounds = array<i64: 256, 128>}, {pipeline_mode = #tpu.pipeline_mode<synchronous>, transform_indices = @transform_4, window_bounds = array<i64: 128, 128>}, {pipeline_mode = #tpu.pipeline_mode<synchronous>, transform_indices = @transform_5, window_bounds = array<i64: 128, 128>}, {pipeline_mode = #tpu.pipeline_mode<synchronous>, transform_indices = @transform_6, window_bounds = array<i64: 128, 128>}, {pipeline_mode = #tpu.pipeline_mode<synchronous>, transform_indices = @transform_7, window_bounds = array<i64: 1, 128>}, {pipeline_mode = #tpu.pipeline_mode<synchronous>, transform_indices = @transform_8, window_bounds = array<i64: 128, 512>}, {pipeline_mode = #tpu.pipeline_mode<synchronous>, transform_indices = @transform_9, window_bounds = array<i64: 1, 512>}, {pipeline_mode = #tpu.pipeline_mode<synchronous>, transform_indices = @transform_10, window_bounds = array<i64: 512, 256>}, {pipeline_mode = #tpu.pipeline_mode<synchronous>, transform_indices = @transform_11, window_bounds = array<i64: 1, 256>}, {pipeline_mode = #tpu.pipeline_mode<synchronous>, transform_indices = @transform_12, window_bounds = array<i64: 256, 128>}, {pipeline_mode = #tpu.pipeline_mode<synchronous>, transform_indices = @transform_13, window_bounds = array<i64: 1, 128>}, {transform_indices = @transform_14, window_bounds = array<i64: 8, 128>}, {transform_indices = @transform_15, window_bounds = array<i64: 8, 128>}, {transform_indices = @transform_16, window_bounds = array<i64: 8, 128>}, {transform_indices = @transform_17, window_bounds = array<i64: 8, 128>}]} {
    %c0_i32 = arith.constant 0 : i32
    %0 = arith.cmpi eq, %arg1, %c0_i32 : i32
    %1 = arith.extui %0 : i1 to i32
    %c0_i32_0 = arith.constant 0 : i32
    %2 = arith.cmpi ne, %1, %c0_i32_0 : i32
    scf.if %2 {
      %cst_9 = arith.constant 0.000000e+00 : f32
      %12 = vector.broadcast %cst_9 : f32 to vector<8x128xf32>
      %c0_10 = arith.constant 0 : index
      %c0_11 = arith.constant 0 : index
      %13 = vector.load %arg20[%c0_10, %c0_11] : memref<8x128xf32, #tpu.memory_space<vmem>>, vector<8x128xf32>
      tpu.vector_store %arg20[%c0_10, %c0_11], %12 {strides = array<i32>} : memref<8x128xf32, #tpu.memory_space<vmem>>, vector<8x128xf32>,
    } else {
    }
    %c0 = arith.constant 0 : index
    %c0_1 = arith.constant 0 : index
    %3 = vector.load %arg20[%c0, %c0_1] : memref<8x128xf32, #tpu.memory_space<vmem>>, vector<8x128xf32>
    %c0_2 = arith.constant 0 : index
    %c0_3 = arith.constant 0 : index
    %4 = vector.load %arg2[%c0_2, %c0_3] : memref<8x256xbf16, #tpu.memory_space<vmem>>, vector<8x256xbf16>
    %c0_4 = arith.constant 0 : index
    %c0_5 = arith.constant 0 : index
    %5 = vector.load %arg5[%c0_4, %c0_5] : memref<256x128xbf16, #tpu.memory_space<vmem>>, vector<256x128xbf16>
    %cst = arith.constant dense<0.000000e+00> : vector<8x128xf32>
    %6 = tpu.matmul %4, %5, %cst {dimension_numbers = #tpu.dot_dimension_numbers<[1], [0], [0], [1], [0, 0, 1, 1], [], []>} : vector<8x256xbf16>, vector<256x128xbf16>, vector<8x128xf32> -> vector<8x128xf32>
    %7 = arith.addf %3, %6 : vector<8x128xf32>
    %c0_6 = arith.constant 0 : index
    %c0_7 = arith.constant 0 : index
    %8 = vector.load %arg20[%c0_6, %c0_7] : memref<8x128xf32, #tpu.memory_space<vmem>>, vector<8x128xf32>
    tpu.vector_store %arg20[%c0_6, %c0_7], %7 {strides = array<i32>} : memref<8x128xf32, #tpu.memory_space<vmem>>, vector<8x128xf32>,
    %c2_i32 = arith.constant 2 : i32
    %9 = arith.cmpi eq, %arg1, %c2_i32 : i32
    %10 = arith.extui %9 : i1 to i32
    %c0_i32_8 = arith.constant 0 : i32
    %11 = arith.cmpi ne, %10, %c0_i32_8 : i32
    scf.if %11 {
      %c0_9 = arith.constant 0 : index
      %c0_10 = arith.constant 0 : index
      %12 = vector.load %arg20[%c0_9, %c0_10] : memref<8x128xf32, #tpu.memory_space<vmem>>, vector<8x128xf32>
      %13 = arith.mulf %12, %12 : vector<8x128xf32>
      %cst_11 = arith.constant dense<0.000000e+00> : vector<8xf32>
      %14 = vector.multi_reduction <add>, %13, %cst_11 [1] : vector<8x128xf32> to vector<8xf32>
      %15 = vector.shape_cast %14 : vector<8xf32> to vector<8x1xf32>
      %cst_12 = arith.constant 9.99999996E-13 : f32
      %16 = vector.broadcast %cst_12 : f32 to vector<8x1xf32>
      %17 = arith.addf %15, %16 : vector<8x1xf32>
      %18 = math.rsqrt %17 : vector<8x1xf32>
      %19 = vector.broadcast %18 : vector<8x1xf32> to vector<8x128xf32>
      %20 = arith.mulf %12, %19 : vector<8x128xf32>
      %c0_13 = arith.constant 0 : index
      %c0_14 = arith.constant 0 : index
      %c0_15 = arith.constant 0 : index
      %21 = vector.load %arg3[%c0_13, %c0_14, %c0_15] : memref<8x8x128xf32, #tpu.memory_space<vmem>>, vector<8x8x128xf32>
      %c0_16 = arith.constant 0 : index
      %c0_17 = arith.constant 0 : index
      %22 = vector.load %arg4[%c0_16, %c0_17] : memref<8x8xf32, #tpu.memory_space<vmem>>, vector<8x8xf32>
      %23 = vector.shape_cast %22 : vector<8x8xf32> to vector<8x8x1xf32>
      %24 = vector.broadcast %23 : vector<8x8x1xf32> to vector<8x8x128xf32>
      %25 = arith.mulf %21, %24 : vector<8x8x128xf32>
      %cst_18 = arith.constant dense<0.000000e+00> : vector<8x128xf32>
      %26 = vector.multi_reduction <add>, %25, %cst_18 [1] : vector<8x8x128xf32> to vector<8x128xf32>
      %c0_19 = arith.constant 0 : index
      %c0_20 = arith.constant 0 : index
      %27 = vector.load %arg6[%c0_19, %c0_20] : memref<128x128xbf16, #tpu.memory_space<vmem>>, vector<128x128xbf16>
      %28 = arith.extf %27 : vector<128x128xbf16> to vector<128x128xf32>
      %cst_21 = arith.constant dense<0.000000e+00> : vector<8x128xf32>
      %29 = tpu.matmul %26, %28, %cst_21 {dimension_numbers = #tpu.dot_dimension_numbers<[1], [0], [0], [1], [0, 0, 1, 1], [], []>} : vector<8x128xf32>, vector<128x128xf32>, vector<8x128xf32> -> vector<8x128xf32>
      %30 = arith.mulf %29, %29 : vector<8x128xf32>
      %cst_22 = arith.constant dense<0.000000e+00> : vector<8xf32>
      %31 = vector.multi_reduction <add>, %30, %cst_22 [1] : vector<8x128xf32> to vector<8xf32>
      %32 = vector.shape_cast %31 : vector<8xf32> to vector<8x1xf32>
      %cst_23 = arith.constant 9.99999996E-13 : f32
      %33 = vector.broadcast %cst_23 : f32 to vector<8x1xf32>
      %34 = arith.addf %32, %33 : vector<8x1xf32>
      %35 = math.rsqrt %34 : vector<8x1xf32>
      %36 = vector.broadcast %35 : vector<8x1xf32> to vector<8x128xf32>
      %37 = arith.mulf %29, %36 : vector<8x128xf32>
      %c0_24 = arith.constant 0 : index
      %c0_25 = arith.constant 0 : index
      %38 = vector.load %arg7[%c0_24, %c0_25] : memref<128x128xbf16, #tpu.memory_space<vmem>>, vector<128x128xbf16>
      %39 = arith.extf %38 : vector<128x128xbf16> to vector<128x128xf32>
      %cst_26 = arith.constant dense<0.000000e+00> : vector<8x128xf32>
      %40 = tpu.matmul %20, %39, %cst_26 {dimension_numbers = #tpu.dot_dimension_numbers<[1], [0], [0], [1], [0, 0, 1, 1], [], []>} : vector<8x128xf32>, vector<128x128xf32>, vector<8x128xf32> -> vector<8x128xf32>
      %c0_27 = arith.constant 0 : index
      %c0_28 = arith.constant 0 : index
      %41 = vector.load %arg8[%c0_27, %c0_28] : memref<128x128xbf16, #tpu.memory_space<vmem>>, vector<128x128xbf16>
      %42 = arith.extf %41 : vector<128x128xbf16> to vector<128x128xf32>
      %cst_29 = arith.constant dense<0.000000e+00> : vector<8x128xf32>
      %43 = tpu.matmul %37, %42, %cst_29 {dimension_numbers = #tpu.dot_dimension_numbers<[1], [0], [0], [1], [0, 0, 1, 1], [], []>} : vector<8x128xf32>, vector<128x128xf32>, vector<8x128xf32> -> vector<8x128xf32>
      %44 = arith.addf %40, %43 : vector<8x128xf32>
      %c0_30 = arith.constant 0 : index
      %c0_31 = arith.constant 0 : index
      %45 = vector.load %arg9[%c0_30, %c0_31] : memref<1x128xf32, #tpu.memory_space<vmem>>, vector<1x128xf32>
      %46 = vector.broadcast %45 : vector<1x128xf32> to vector<8x128xf32>
      %47 = arith.addf %44, %46 : vector<8x128xf32>
      %cst_32 = arith.constant 0.000000e+00 : f32
      %48 = vector.broadcast %cst_32 : f32 to vector<8x128xf32>
      %49 = arith.maximumf %47, %48 : vector<8x128xf32>
      %c0_33 = arith.constant 0 : index
      %c0_34 = arith.constant 0 : index
      %50 = vector.load %arg10[%c0_33, %c0_34] : memref<128x512xbf16, #tpu.memory_space<vmem>>, vector<128x512xbf16>
      %51 = arith.extf %50 : vector<128x512xbf16> to vector<128x512xf32>
      %cst_35 = arith.constant dense<0.000000e+00> : vector<8x512xf32>
      %52 = tpu.matmul %49, %51, %cst_35 {dimension_numbers = #tpu.dot_dimension_numbers<[1], [0], [0], [1], [0, 0, 1, 1], [], []>} : vector<8x128xf32>, vector<128x512xf32>, vector<8x512xf32> -> vector<8x512xf32>
      %c0_36 = arith.constant 0 : index
      %c0_37 = arith.constant 0 : index
      %53 = vector.load %arg11[%c0_36, %c0_37] : memref<1x512xf32, #tpu.memory_space<vmem>>, vector<1x512xf32>
      %54 = vector.broadcast %53 : vector<1x512xf32> to vector<8x512xf32>
      %55 = arith.addf %52, %54 : vector<8x512xf32>
      %cst_38 = arith.constant 0.000000e+00 : f32
      %56 = vector.broadcast %cst_38 : f32 to vector<8x512xf32>
      %57 = arith.maximumf %55, %56 : vector<8x512xf32>
      %c0_39 = arith.constant 0 : index
      %c0_40 = arith.constant 0 : index
      %58 = vector.load %arg12[%c0_39, %c0_40] : memref<512x256xbf16, #tpu.memory_space<vmem>>, vector<512x256xbf16>
      %59 = arith.extf %58 : vector<512x256xbf16> to vector<512x256xf32>
      %cst_41 = arith.constant dense<0.000000e+00> : vector<8x256xf32>
      %60 = tpu.matmul %57, %59, %cst_41 {dimension_numbers = #tpu.dot_dimension_numbers<[1], [0], [0], [1], [0, 0, 1, 1], [], []>} : vector<8x512xf32>, vector<512x256xf32>, vector<8x256xf32> -> vector<8x256xf32>
      %c0_42 = arith.constant 0 : index
      %c0_43 = arith.constant 0 : index
      %61 = vector.load %arg13[%c0_42, %c0_43] : memref<1x256xf32, #tpu.memory_space<vmem>>, vector<1x256xf32>
      %62 = vector.broadcast %61 : vector<1x256xf32> to vector<8x256xf32>
      %63 = arith.addf %60, %62 : vector<8x256xf32>
      %cst_44 = arith.constant 0.000000e+00 : f32
      %64 = vector.broadcast %cst_44 : f32 to vector<8x256xf32>
      %65 = arith.maximumf %63, %64 : vector<8x256xf32>
      %c0_45 = arith.constant 0 : index
      %c0_46 = arith.constant 0 : index
      %66 = vector.load %arg14[%c0_45, %c0_46] : memref<256x128xbf16, #tpu.memory_space<vmem>>, vector<256x128xbf16>
      %67 = arith.extf %66 : vector<256x128xbf16> to vector<256x128xf32>
      %cst_47 = arith.constant dense<0.000000e+00> : vector<8x128xf32>
      %68 = tpu.matmul %65, %67, %cst_47 {dimension_numbers = #tpu.dot_dimension_numbers<[1], [0], [0], [1], [0, 0, 1, 1], [], []>} : vector<8x256xf32>, vector<256x128xf32>, vector<8x128xf32> -> vector<8x128xf32>
      %c0_48 = arith.constant 0 : index
      %c0_49 = arith.constant 0 : index
      %69 = vector.load %arg15[%c0_48, %c0_49] : memref<1x128xf32, #tpu.memory_space<vmem>>, vector<1x128xf32>
      %70 = vector.broadcast %69 : vector<1x128xf32> to vector<8x128xf32>
      %71 = arith.addf %68, %70 : vector<8x128xf32>
      %c0_50 = arith.constant 0 : index
      %c0_51 = arith.constant 0 : index
      %72 = vector.load %arg16[%c0_50, %c0_51] : memref<8x128xf32, #tpu.memory_space<vmem>>, vector<8x128xf32>
      tpu.vector_store %arg16[%c0_50, %c0_51], %71 {strides = array<i32>} : memref<8x128xf32, #tpu.memory_space<vmem>>, vector<8x128xf32>,
      %c0_52 = arith.constant 0 : index
      %c0_53 = arith.constant 0 : index
      %73 = vector.load %arg17[%c0_52, %c0_53] : memref<8x128xf32, #tpu.memory_space<vmem>>, vector<8x128xf32>
      tpu.vector_store %arg17[%c0_52, %c0_53], %20 {strides = array<i32>} : memref<8x128xf32, #tpu.memory_space<vmem>>, vector<8x128xf32>,
      %c0_54 = arith.constant 0 : index
      %c0_55 = arith.constant 0 : index
      %74 = vector.load %arg18[%c0_54, %c0_55] : memref<8x128xf32, #tpu.memory_space<vmem>>, vector<8x128xf32>
      tpu.vector_store %arg18[%c0_54, %c0_55], %37 {strides = array<i32>} : memref<8x128xf32, #tpu.memory_space<vmem>>, vector<8x128xf32>,
      %c0_56 = arith.constant 0 : index
      %c0_57 = arith.constant 0 : index
      %75 = vector.load %arg19[%c0_56, %c0_57] : memref<8x128xf32, #tpu.memory_space<vmem>>, vector<8x128xf32>
      tpu.vector_store %arg19[%c0_56, %c0_57], %49 {strides = array<i32>} : memref<8x128xf32, #tpu.memory_space<vmem>>, vector<8x128xf32>,
    } else {
    }
    return
  }
  func.func @transform_0(%arg0: i32, %arg1: i32) -> (i32, i32) {
    %c0_i32 = arith.constant 0 : i32
    return %arg0, %arg1 : i32, i32
  }
  func.func @transform_1(%arg0: i32, %arg1: i32) -> (i32, i32, i32) {
    %c0_i32 = arith.constant 0 : i32
    %c0_i32_0 = arith.constant 0 : i32
    %c0_i32_1 = arith.constant 0 : i32
    return %arg0, %c0_i32, %c0_i32_0 : i32, i32, i32
  }
  func.func @transform_2(%arg0: i32, %arg1: i32) -> (i32, i32) {
    %c0_i32 = arith.constant 0 : i32
    %c0_i32_0 = arith.constant 0 : i32
    return %arg0, %c0_i32 : i32, i32
  }
  func.func @transform_3(%arg0: i32, %arg1: i32) -> (i32, i32) {
    %c0_i32 = arith.constant 0 : i32
    %c0_i32_0 = arith.constant 0 : i32
    return %arg1, %c0_i32 : i32, i32
  }
  func.func @transform_4(%arg0: i32, %arg1: i32) -> (i32, i32) {
    %c0_i32 = arith.constant 0 : i32
    %c0_i32_0 = arith.constant 0 : i32
    %c0_i32_1 = arith.constant 0 : i32
    return %c0_i32, %c0_i32_0 : i32, i32
  }
  func.func @transform_5(%arg0: i32, %arg1: i32) -> (i32, i32) {
    %c0_i32 = arith.constant 0 : i32
    %c0_i32_0 = arith.constant 0 : i32
    %c0_i32_1 = arith.constant 0 : i32
    return %c0_i32, %c0_i32_0 : i32, i32
  }
  func.func @transform_6(%arg0: i32, %arg1: i32) -> (i32, i32) {
    %c0_i32 = arith.constant 0 : i32
    %c0_i32_0 = arith.constant 0 : i32
    %c0_i32_1 = arith.constant 0 : i32
    return %c0_i32, %c0_i32_0 : i32, i32
  }
  func.func @transform_7(%arg0: i32, %arg1: i32) -> (i32, i32) {
    %c0_i32 = arith.constant 0 : i32
    %c0_i32_0 = arith.constant 0 : i32
    %c0_i32_1 = arith.constant 0 : i32
    return %c0_i32, %c0_i32_0 : i32, i32
  }
  func.func @transform_8(%arg0: i32, %arg1: i32) -> (i32, i32) {
    %c0_i32 = arith.constant 0 : i32
    %c0_i32_0 = arith.constant 0 : i32
    %c0_i32_1 = arith.constant 0 : i32
    return %c0_i32, %c0_i32_0 : i32, i32
  }
  func.func @transform_9(%arg0: i32, %arg1: i32) -> (i32, i32) {
    %c0_i32 = arith.constant 0 : i32
    %c0_i32_0 = arith.constant 0 : i32
    %c0_i32_1 = arith.constant 0 : i32
    return %c0_i32, %c0_i32_0 : i32, i32
  }
  func.func @transform_10(%arg0: i32, %arg1: i32) -> (i32, i32) {
    %c0_i32 = arith.constant 0 : i32
    %c0_i32_0 = arith.constant 0 : i32
    %c0_i32_1 = arith.constant 0 : i32
    return %c0_i32, %c0_i32_0 : i32, i32
  }
  func.func @transform_11(%arg0: i32, %arg1: i32) -> (i32, i32) {
    %c0_i32 = arith.constant 0 : i32
    %c0_i32_0 = arith.constant 0 : i32
    %c0_i32_1 = arith.constant 0 : i32
    return %c0_i32, %c0_i32_0 : i32, i32
  }
  func.func @transform_12(%arg0: i32, %arg1: i32) -> (i32, i32) {
    %c0_i32 = arith.constant 0 : i32
    %c0_i32_0 = arith.constant 0 : i32
    %c0_i32_1 = arith.constant 0 : i32
    return %c0_i32, %c0_i32_0 : i32, i32
  }
  func.func @transform_13(%arg0: i32, %arg1: i32) -> (i32, i32) {
    %c0_i32 = arith.constant 0 : i32
    %c0_i32_0 = arith.constant 0 : i32
    %c0_i32_1 = arith.constant 0 : i32
    return %c0_i32, %c0_i32_0 : i32, i32
  }
  func.func @transform_14(%arg0: i32, %arg1: i32) -> (i32, i32) {
    %c0_i32 = arith.constant 0 : i32
    %c0_i32_0 = arith.constant 0 : i32
    return %arg0, %c0_i32 : i32, i32
  }
  func.func @transform_15(%arg0: i32, %arg1: i32) -> (i32, i32) {
    %c0_i32 = arith.constant 0 : i32
    %c0_i32_0 = arith.constant 0 : i32
    return %arg0, %c0_i32 : i32, i32
  }
  func.func @transform_16(%arg0: i32, %arg1: i32) -> (i32, i32) {
    %c0_i32 = arith.constant 0 : i32
    %c0_i32_0 = arith.constant 0 : i32
    return %arg0, %c0_i32 : i32, i32
  }
  func.func @transform_17(%arg0: i32, %arg1: i32) -> (i32, i32) {
    %c0_i32 = arith.constant 0 : i32
    %c0_i32_0 = arith.constant 0 : i32
    return %arg0, %c0_i32 : i32, i32
  }
}

</mosaic_0001>

<bundles_post_ra>
// kernel: rgcl_clip_forward.1
= control target key start
LH: loop header
LB: loop body
LE: loop exit
PB: predicated region body
PF: predicated region fallthrough
CT: control target
= control target key end

     0   :  { %s3431_s24 = smov 0   ;;  %s3433_s25 = smov 0   ;;  %s4016_s0 = inlined_call_operand.vmem [shape: bf16[8,768], index: 0, kind: input, shape index: {}]   ;;  %s4017_s1 = inlined_call_operand.vmem [shape: f32[8,8,128], index: 1, kind: input, shape index: {}]   ;;  %s4018_s2 = inlined_call_operand.vmem [shape: f32[8,8], index: 2, kind: input, shape index: {}]   ;;  %s4019_s3 = inlined_call_operand.vmem [shape: bf16[768,128], index: 3, kind: input, shape index: {}]   ;;  %s4020_s4 = inlined_call_operand.vmem [shape: bf16[128,128], index: 4, kind: input, shape index: {}]   ;;  %s4021_s5 = inlined_call_operand.vmem [shape: bf16[128,128], index: 5, kind: input, shape index: {}]   ;;  %s4022_s6 = inlined_call_operand.vmem [shape: bf16[128,128], index: 6, kind: input, shape index: {}]   ;;  %s4023_s7 = inlined_call_operand.vmem [shape: f32[1,128], index: 7, kind: input, shape index: {}]   ;;  %s4024_s8 = inlined_call_operand.vmem [shape: bf16[128,512], index: 8, kind: input, shape index: {}]   ;;  %s4025_s9 = inlined_call_operand.vmem [shape: f32[1,512], index: 9, kind: input, shape index: {}]   ;;  %s4026_s10 = inlined_call_operand.vmem [shape: bf16[512,256], index: 10, kind: input, shape index: {}]   ;;  %s4027_s11 = inlined_call_operand.vmem [shape: f32[1,256], index: 11, kind: input, shape index: {}]   ;;  %s4028_s12 = inlined_call_operand.vmem [shape: bf16[256,128], index: 12, kind: input, shape index: {}]   ;;  %s4029_s13 = inlined_call_operand.vmem [shape: f32[1,128], index: 13, kind: input, shape index: {}]   ;;  %s4030_s14 = inlined_call_operand.vmem [shape: f32[8,128], index: 14, kind: output, shape index: {0}]   ;;  %s4031_s15 = inlined_call_operand.vmem [shape: f32[8,128], index: 15, kind: output, shape index: {1}]   ;;  %s4032_s16 = inlined_call_operand.vmem [shape: f32[8,128], index: 16, kind: output, shape index: {2}]   ;;  %s4033_s17 = inlined_call_operand.vmem [shape: f32[8,128], index: 17, kind: output, shape index: {3}]  }
   0x1   :  { %4035 = sst [smem:[#allocation3_spill]] %s4016_s0  ;;  %s3435_s26 = smov 0  }
   0x2   :  { %4036 = sst [smem:[#allocation4_spill]] %s4017_s1 }
   0x3   :  { %4037 = sst [smem:[#allocation5_spill]] %s4018_s2 }
   0x4 LB: > { %s37_s27 = sadd.s32 1, %s3331_s25  ;;  %p2281_p0 = scmp.ge.s32.totalorder %s3335_s26, 1  ;;  %s3335_s26 = sphi %s3435_s26, %s28_s26   ;;  %s3331_s25 = sphi %s3433_s25, %s4042_s25   ;;  %s3327_s24 = sphi %s3431_s24, %s4041_s24  }
   0x5   : > { %p38_p1 = scmp.ge.s32.totalorder %s37_s27, 3  ;;  %p544_p2 = scmp.lt.s32.totalorder %s3335_s26, 4 }
   0x7   : > { %s4044_s27 = smov (%p38_p1, %s37_s27), 0  ;;  %p545_p3 = pnand %p2281_p0, %p544_p2 }
   0x8   : > { %s2282_s28 = sshll.u32 (!%p545_p3), %s3327_s24, 1  ;;  %s2284_s29 = sshll.u32 (!%p545_p3), %s3327_s24, 5 }
   0x9   : > { %548 = sbr.rel (%p545_p3) target bundleno = 1630 (0x65e), region = 76  ;;  %p628_p4 = scmp.lt.s32.totalorder (!%p545_p3), %s2282_s28, 5 }
   0xa   : > { %p646_p5 = scmp.lt.s32.totalorder (!%p545_p3), %s2284_s29, 95  ;;  %s4038_s19 = sld [smem:[#allocation3_spill]] (!%p545_p3) }
   0xb   : > { %p2286_p6 = scmp.ne.s32.totalorder (!%p545_p3), %s3327_s24, 0 }
  0x10   : > { %s4046_s28 = smov (!%p628_p4, %s2282_s28), 5  ;;  %s4048_s29 = smov (!%p646_p5, %s2284_s29), 95 }
  0x11   : > { %s2283_s0 = sshll.u32 %s4046_s28, 2  ;;  %s2285_s20 = sshll.u32 %s4048_s29, 2  ;;  %v3337_v0 = vmov (!%p2286_p6), 0.0  }
  0x12   : > { %s633_s1 = scalar_lea.vmem %s4038_s19, %s2283_s0  ;;  %s3459_s23 = scalar_lea.vmem %s4019_s3, %s2285_s20  ;;  %672 = vst [vmem:[#allocation2] sm:$0xff] (!%p2286_p6), %v3337_v0 }
  0x13   : > { %671 = sbr.rel (%p2286_p6) target bundleno = 26 (0x1a), region = 80 }
  0x1a PF: > { %v3147_v1 = vld [vmem:[%s3459_s23 + $0x40] sm:$0xff]   ;;  %v3149_v3 = vld [vmem:[%s3459_s23 + $0x48] sm:$0xff]   ;;  %v3151_v5 = vld [vmem:[%s3459_s23 + $0x50] sm:$0xff]   ;;  %p2305_p7 = scmp.ne.s32.totalorder %s3327_s24, 2 }
  0x1b   : > { %v3148_v2 = vld [vmem:[%s3459_s23] sm:$0xff]   ;;  %2510 = vmatprep.subr.bf16.mxu0 %v3147_v1  ;;  %v3150_v4 = vld [vmem:[%s3459_s23 + $0x8] sm:$0xff]   ;;  %v3152_v6 = vld [vmem:[%s3459_s23 + $0x10] sm:$0xff]   ;;  %v872_v27 = vlaneseq (!%p2305_p7)  ;;  %v3338_v29 = vmov (!%p2305_p7), 0.0|0.0   ;;  %s4039_s2 = sld [smem:[#allocation5_spill]] (!%p2305_p7)  ;;  %vm3339_vm0 = vmmov (!%p2305_p7), 0  }
  0x1c   : > { %2511 = vmatpush3.bf16.msra.mxu0 %v3148_v2  ;;  %v3153_v7 = vld [vmem:[%s3459_s23 + $0x58] sm:$0xff]   ;;  %v3155_v9 = vld [vmem:[%s3459_s23 + $0x60] sm:$0xff]   ;;  %v3157_v11 = vld [vmem:[%s3459_s23 + $0x68] sm:$0xff]   ;;  %v3340_v54 = vmov (!%p2305_p7), 0.0   ;;  %s4040_s20 = sld [smem:[#allocation4_spill]] (!%p2305_p7)  ;;  %vm1024_vm1 = vcmask (!%p2305_p7), 1041409  }
  0x1d   : > { %2512 = vmatprep.subr.bf16.mxu0 %v3149_v3  ;;  %v3154_v8 = vld [vmem:[%s3459_s23 + $0x18] sm:$0xff]   ;;  %v3156_v10 = vld [vmem:[%s3459_s23 + $0x20] sm:$0xff]   ;;  %v3158_v14 = vld [vmem:[%s3459_s23 + $0x28] sm:$0xff]   ;;  %v3486_v31 = vshrl.u32 (!%p2305_p7), %v872_v27, 7  ;;  %1510 = vmatprep.mubr.f32.mxu1 (!%p2305_p7), %v3340_v54  ;;  %vm1026_vm2 = vcmask (!%p2305_p7), 1042434   ;;  %vm1028_vm3 = vcmask (!%p2305_p7), 1043459  }
  0x1e   : > { %v674_v12 = vld [vmem:[%s633_s1] sm:$0xff]  ;;  %v3159_v15 = vld [vmem:[%s3459_s23 + $0x70] sm:$0xff]   ;;  %v3161_v17 = vld [vmem:[%s3459_s23 + $0x78] sm:$0xff]   ;;  %vm1030_vm4 = vcmask (!%p2305_p7), 1044484   ;;  %vm1032_vm5 = vcmask (!%p2305_p7), 1045509   ;;  %vm1034_vm6 = vcmask (!%p2305_p7), 1046534  }
  0x1f   : > { %v2288_v13 = vcombine.high %v674_v12, %v674_v12  ;;  %v3160_v16 = vld [vmem:[%s3459_s23 + $0x30] sm:$0xff]   ;;  %v3162_v18 = vld [vmem:[%s3459_s23 + $0x38] sm:$0xff]   ;;  %v2287_v19 = vcombine.low %v674_v12, %v674_v12  ;;  %v673_v21 = vld [vmem:[#allocation2] sm:$0xff]  ;;  %v888_v33 = vsub.s32 (!%p2305_p7), 2, %v3486_v31  ;;  %v3494_v34 = vsub.s32 (!%p2305_p7), 0, %v3486_v31 }
  0x20   : > { %2513 = vmatpush3.bf16.msra.mxu0 %v3150_v4  ;;  %v2315_v28 = vld [vmem:[%s4020_s4] sm:$0xff] (!%p2305_p7)   ;;  %v2474_v32 = vld [vmem:[%s4020_s4 + $0x8] sm:$0xff] (!%p2305_p7)   ;;  %v895_v35 = vsub.s32 (!%p2305_p7), 3, %v3486_v31  ;;  %v3498_v36 = vsub.s32 (!%p2305_p7), 1, %v3486_v31  ;;  %v2475_v39 = vld [vmem:[%s4020_s4 + $0x10] sm:$0xff] (!%p2305_p7)   ;;  %v909_v42 = vsub.s32 (!%p2305_p7), 5, %v3486_v31 }
  0x21   : > { %2514 = vmatprep.subr.bf16.mxu0 %v3151_v5  ;;  %842 = vmatprep.mubr.bf16.mxu0 %v2288_v13  ;;  %v871_v30 = vld [vmem:[%s4039_s2] sm:$0xff] (!%p2305_p7)  ;;  %v902_v43 = vsub.s32 (!%p2305_p7), 4, %v3486_v31  ;;  %v2476_v44 = vld [vmem:[%s4020_s4 + $0x18] sm:$0xff] (!%p2305_p7)   ;;  %v923_v47 = vsub.s32 (!%p2305_p7), 7, %v3486_v31  ;;  %v916_v48 = vsub.s32 (!%p2305_p7), 6, %v3486_v31  ;;  %v2478_v52 = vld [vmem:[%s4020_s4 + $0x28] sm:$0xff] (!%p2305_p7)  }
  0x22   : > { %v889_v37 = vrot.slane (!%p2305_p7), %v871_v30, %v888_v33  ;;  %v875_v38 = vrot.slane (!%p2305_p7), %v871_v30, %v3494_v34  ;;  %v896_v40 = vrot.slane (!%p2305_p7), %v871_v30, %v895_v35  ;;  %v882_v41 = vrot.slane (!%p2305_p7), %v871_v30, %v3498_v36  ;;  %v2477_v49 = vld [vmem:[%s4020_s4 + $0x20] sm:$0xff] (!%p2305_p7)   ;;  %v2479_v53 = vld [vmem:[%s4020_s4 + $0x30] sm:$0xff] (!%p2305_p7)   ;;  %v2480_v55 = vld [vmem:[%s4020_s4 + $0x38] sm:$0xff] (!%p2305_p7)  }
  0x23   : > { %v910_v45 = vrot.slane (!%p2305_p7), %v871_v30, %v909_v42  ;;  %v903_v46 = vrot.slane (!%p2305_p7), %v871_v30, %v902_v43  ;;  %v924_v50 = vrot.slane (!%p2305_p7), %v871_v30, %v923_v47  ;;  %v917_v51 = vrot.slane (!%p2305_p7), %v871_v30, %v916_v48  ;;  %v865_v56 = vld [vmem:[%s4040_s20 + $0x10] sm:$0xff] (!%p2305_p7)  ;;  %v863_v57 = vld [vmem:[%s4040_s20] sm:$0xff] (!%p2305_p7)  ;;  %v866_v62 = vld [vmem:[%s4040_s20 + $0x18] sm:$0xff] (!%p2305_p7) }
  0x24   : > { %2515 = vmatpush3.bf16.msra.mxu0 %v3152_v6  ;;  %891 = vbcast.lane.b32.xlu1 (!%p2305_p7), %v889_v37, 256  ;;  %v864_v63 = vld [vmem:[%s4040_s20 + $0x8] sm:$0xff] (!%p2305_p7)  ;;  %v867_v13 = vld [vmem:[%s4040_s20 + $0x20] sm:$0xff] (!%p2305_p7)  ;;  %vm1036_vm7 = vcmask (!%p2305_p7), 1047559   ;;  %v2500_v31 = vld [vmem:[%s4028_s12 + $0x30] sm:$0xff] (!%p2305_p7)  }
  0x25   : > { %2516 = vmatprep.subr.bf16.mxu0 %v3153_v7  ;;  %877 = vbcast.lane.b32.xlu0 (!%p2305_p7), %v875_v38, 256  ;;  %v868_v12 = vld [vmem:[%s4040_s20 + $0x28] sm:$0xff] (!%p2305_p7) }
  0x28   : > { %2517 = vmatpush3.bf16.msra.mxu0 %v3154_v8  ;;  %898 = vbcast.lane.b32.xlu1 (!%p2305_p7), %v896_v40, 256 }
  0x29   : > { %2518 = vmatprep.subr.bf16.mxu0 %v3155_v9  ;;  %884 = vbcast.lane.b32.xlu0 (!%p2305_p7), %v882_v41, 256 }
  0x2c   : > { %2519 = vmatpush3.bf16.msra.mxu0 %v3156_v10  ;;  %912 = vbcast.lane.b32.xlu1 (!%p2305_p7), %v910_v45, 256 }
  0x2d   : > { %2520 = vmatprep.subr.bf16.mxu0 %v3157_v11  ;;  %905 = vbcast.lane.b32.xlu0 (!%p2305_p7), %v903_v46, 256 }
  0x30   : > { %2521 = vmatpush3.bf16.msra.mxu0 %v3158_v14  ;;  %926 = vbcast.lane.b32.xlu1 (!%p2305_p7), %v924_v50, 256 }
  0x31   : > { %2522 = vmatprep.subr.bf16.mxu0 %v3159_v15  ;;  %919 = vbcast.lane.b32.xlu0 (!%p2305_p7), %v917_v51, 256 }
  0x34   : > { %2523 = vmatpush3.bf16.msra.mxu0 %v3160_v16 }
  0x35   : > { %2524 = vmatprep.subr.bf16.mxu0 %v3161_v17 }
  0x38   : > { %2525 = vmatpush3.bf16.msra.mxu0 %v3162_v18 }
  0x39   : > { %2723 = vmatprep.subr.bf16.mxu0 (!%p2305_p7), %v3338_v29 }
  0x3b   : > { %843 = vmatmul.mubr.bf16.vlgmr.msra.gmra.mrb[0].mxu0 %v2287_v19 }
  0x3c   : > { %2725 = vmatpush3.bf16.msra.mxu0 (!%p2305_p7), %v2315_v28  ;;  %2650 = vmatprep.mubr.msk.f32.mxu0 (!%p2305_p7), %vm3339_vm0, %v3340_v54 }
  0x3d   : > { %2726 = vmatprep.subr.bf16.mxu0 (!%p2305_p7), %v3338_v29 }
  0x40   : > { %2728 = vmatpush3.bf16.msra.mxu0 (!%p2305_p7), %v2474_v32 }
  0x41   : > { %2729 = vmatprep.subr.bf16.mxu0 (!%p2305_p7), %v3338_v29 }
  0x44   : > { %2731 = vmatpush3.bf16.msra.mxu0 (!%p2305_p7), %v2475_v39 }
  0x45   : > { %2732 = vmatprep.subr.bf16.mxu0 (!%p2305_p7), %v3338_v29 }
  0x48   : > { %2734 = vmatpush3.bf16.msra.mxu0 (!%p2305_p7), %v2476_v44 }
  0x49   : > { %2735 = vmatprep.subr.bf16.mxu0 (!%p2305_p7), %v3338_v29 }
  0x4c   : > { %2737 = vmatpush3.bf16.msra.mxu0 (!%p2305_p7), %v2477_v49 }
  0x4d   : > { %2738 = vmatprep.subr.bf16.mxu0 (!%p2305_p7), %v3338_v29 }
  0x50   : > { %2740 = vmatpush3.bf16.msra.mxu0 (!%p2305_p7), %v2478_v52 }
  0x51   : > { %2741 = vmatprep.subr.bf16.mxu0 (!%p2305_p7), %v3338_v29 }
  0x54   : > { %2743 = vmatpush3.bf16.msra.mxu0 (!%p2305_p7), %v2479_v53 }
  0x55   : > { %2744 = vmatprep.subr.bf16.mxu0 (!%p2305_p7), %v3338_v29 }
  0x58   : > { %2746 = vmatpush3.bf16.msra.mxu0 (!%p2305_p7), %v2480_v55 }
  0x59   : > { %2747 = vmatprep.subr.bf16.mxu0 (!%p2305_p7), %v3338_v29 }
  0x96   : > { %v892_v58 = vpop.permute.xlu1 (!%p2305_p7), %891 }
  0x97   : > { %v878_v59 = vpop.permute.xlu0 (!%p2305_p7), %877  ;;  %v930_v60 = vmul.f32 (!%p2305_p7), %v892_v58, %v865_v56 }
  0x98   : > { %v928_v61 = vmul.f32 (!%p2305_p7), %v878_v59, %v863_v57 }
  0x99   : > { %v948_v0 = vrot.slane (!%p2305_p7), %v930_v60, 4 }
  0x9a   : > { %v936_v1 = vrot.slane (!%p2305_p7), %v928_v61, 4  ;;  %v899_v2 = vpop.permute.xlu1 (!%p2305_p7), %898 }
  0x9b   : > { %v885_v3 = vpop.permute.xlu0 (!%p2305_p7), %884  ;;  %v949_v4 = vadd.f32 (!%p2305_p7), %v948_v0, %v930_v60  ;;  %v931_v6 = vmul.f32 (!%p2305_p7), %v899_v2, %v866_v62 }
  0x9c   : > { %v937_v5 = vadd.f32 (!%p2305_p7), %v936_v1, %v928_v61  ;;  %v929_v7 = vmul.f32 (!%p2305_p7), %v885_v3, %v864_v63 }
  0x9d   : > { %v950_v8 = vrot.slane (!%p2305_p7), %v949_v4, 2  ;;  %v954_v10 = vrot.slane (!%p2305_p7), %v931_v6, 4 }
  0x9e   : > { %v938_v9 = vrot.slane (!%p2305_p7), %v937_v5, 2  ;;  %v942_v11 = vrot.slane (!%p2305_p7), %v929_v7, 4  ;;  %v913_v14 = vpop.permute.xlu1 (!%p2305_p7), %912 }
  0x9f   : > { %v906_v15 = vpop.permute.xlu0 (!%p2305_p7), %905  ;;  %v955_v17 = vadd.f32 (!%p2305_p7), %v954_v10, %v931_v6  ;;  %v933_v19 = vmul.f32 (!%p2305_p7), %v913_v14, %v868_v12 }
  0xa0   : > { %v939_v16 = vadd.f32 (!%p2305_p7), %v938_v9, %v937_v5  ;;  %v943_v18 = vadd.f32 (!%p2305_p7), %v942_v11, %v929_v7 }
  0xa2   : > { %v927_v28 = vpop.permute.xlu1 (!%p2305_p7), %926  ;;  %v940_v32 = vrot.slane (!%p2305_p7), %v939_v16, 1 }
  0xa3   : > { %v920_v30 = vpop.permute.xlu0 (!%p2305_p7), %919 }
  0xa4   : > { %v941_v49 = vadd.f32 (!%p2305_p7), %v940_v32, %v939_v16 }
 0x10e   : > { %v2526_v20 = vpop.f32.mrb[0].mxu0  ;;  %855 = sbr.rel (%p2305_p7) target bundleno = 1630 (0x65e), region = 84 }
 0x10f   : > { %v2527_v22 = vpop.f32.mrb[1].mxu0 }
 0x110   : > { %v2528_v23 = vadd.f32 %v2527_v22, %v2526_v20  ;;  %v2529_v24 = vpop.f32.mrb[2].mxu0  ;;  %v932_v20 = vmul.f32 (!%p2305_p7), %v906_v15, %v867_v13  ;;  %v956_v22 = vrot.slane (!%p2305_p7), %v955_v17, 2  ;;  %v2379_v15 = vld [vmem:[%s4022_s6] sm:$0xff] (!%p2305_p7)  }
 0x111   : > { %v2530_v25 = vpop.f32.mrb[3].mxu0  ;;  %v870_v24 = vld [vmem:[%s4040_s20 + $0x38] sm:$0xff] (!%p2305_p7) }
 0x112   : > { %v850_v26 = vadd.f32 %v2528_v23, %v673_v21  ;;  %v951_v21 = vadd.f32 (!%p2305_p7), %v950_v8, %v949_v4  ;;  %v944_v23 = vrot.slane (!%p2305_p7), %v943_v18, 2  ;;  %v869_v25 = vld [vmem:[%s4040_s20 + $0x30] sm:$0xff] (!%p2305_p7)  ;;  %v960_v27 = vrot.slane (!%p2305_p7), %v932_v20, 4 }
 0x113   : > { %v957_v37 = vadd.f32 (!%p2305_p7), %v956_v22, %v955_v17  ;;  %v935_v41 = vmul.f32 (!%p2305_p7), %v927_v28, %v870_v24  ;;  %v934_v42 = vmul.f32 (!%p2305_p7), %v920_v30, %v869_v25  ;;  %v2488_v17 = vld [vmem:[%s4022_s6 + $0x8] sm:$0xff] (!%p2305_p7)   ;;  %v2493_v25 = vld [vmem:[%s4022_s6 + $0x30] sm:$0xff] (!%p2305_p7)  }
 0x114   : > { %851 = vst [vmem:[#allocation2] sm:$0xff] %v850_v26  ;;  %v966_v26 = vrot.slane (!%p2305_p7), %v933_v19, 4  ;;  %v945_v38 = vadd.f32 (!%p2305_p7), %v944_v23, %v943_v18  ;;  %v961_v40 = vadd.f32 (!%p2305_p7), %v960_v27, %v932_v20  ;;  %v952_v43 = vrot.slane (!%p2305_p7), %v951_v21, 1  ;;  %v2489_v18 = vld [vmem:[%s4022_s6 + $0x10] sm:$0xff] (!%p2305_p7)   ;;  %v2491_v20 = vld [vmem:[%s4022_s6 + $0x20] sm:$0xff] (!%p2305_p7)   ;;  %v2492_v24 = vld [vmem:[%s4022_s6 + $0x28] sm:$0xff] (!%p2305_p7)  }
 0x115   : > { %v978_v47 = vrot.slane %v935_v41, 4  ;;  %v972_v48 = vrot.slane %v934_v42, 4  ;;  %v958_v50 = vrot.slane %v957_v37, 1 }
 0x116   : > { %v967_v39 = vadd.f32 %v966_v26, %v933_v19  ;;  %v946_v44 = vrot.slane %v945_v38, 1  ;;  %v962_v46 = vrot.slane %v961_v40, 2  ;;  %v953_v57 = vadd.f32 %v952_v43, %v951_v21  ;;  %v2490_v19 = vld [vmem:[%s4022_s6 + $0x18] sm:$0xff]   ;;  %v2482_v43 = vld [vmem:[%s4021_s5 + $0x10] sm:$0xff]  }
 0x117   : > { %v979_v55 = vadd.f32 %v978_v47, %v935_v41  ;;  %v973_v56 = vadd.f32 %v972_v48, %v934_v42  ;;  %v959_v63 = vadd.f32 %v958_v50, %v957_v37  ;;  %v2494_v26 = vld [vmem:[%s4022_s6 + $0x38] sm:$0xff]   ;;  %v2347_v41 = vld [vmem:[%s4021_s5] sm:$0xff]   ;;  %v2481_v42 = vld [vmem:[%s4021_s5 + $0x8] sm:$0xff]  }
 0x118   : > { %v968_v45 = vrot.slane %v967_v39, 2  ;;  %v947_v51 = vadd.f32 %v946_v44, %v945_v38  ;;  %v963_v53 = vadd.f32 %v962_v46, %v961_v40  ;;  %v2483_v44 = vld [vmem:[%s4021_s5 + $0x18] sm:$0xff]   ;;  %v2485_v46 = vld [vmem:[%s4021_s5 + $0x28] sm:$0xff]   ;;  %v2486_v47 = vld [vmem:[%s4021_s5 + $0x30] sm:$0xff]  }
 0x119   : > { %v980_v61 = vrot.slane %v979_v55, 2  ;;  %v974_v62 = vrot.slane %v973_v56, 2  ;;  %v2487_v48 = vld [vmem:[%s4021_s5 + $0x38] sm:$0xff]  }
 0x11a   : > { %v969_v52 = vadd.f32 %v968_v45, %v967_v39  ;;  %v1025_v58 = vsel %vm1024_vm1, %v947_v51, %v941_v49  ;;  %v964_v60 = vrot.slane %v963_v53, 1  ;;  %v2484_v45 = vld [vmem:[%s4021_s5 + $0x20] sm:$0xff]   ;;  %v3167_v50 = vld [vmem:[%s4024_s8 + $0xc] ss:$16 sps:$4 sm:$0xff]  }
 0x11b   : > { %v1027_v0 = vsel %vm1026_vm2, %v953_v57, %v1025_v58  ;;  %v981_v2 = vadd.f32 %v980_v61, %v979_v55  ;;  %v975_v3 = vadd.f32 %v974_v62, %v973_v56  ;;  %v856_v14 = vld [vmem:[#allocation2] sm:$0xff]  ;;  %v3179_v57 = vld [vmem:[%s4024_s8 + $0x4c] ss:$16 sps:$4 sm:$0xff]   ;;  %v3181_v58 = vld [vmem:[%s4024_s8 + $0x48] ss:$16 sps:$4 sm:$0xff]  }
 0x11c   : > { %v970_v59 = vrot.slane %v969_v52, 1  ;;  %v965_v1 = vadd.f32 %v964_v60, %v963_v53  ;;  %v1029_v5 = vsel %vm1028_vm3, %v959_v63, %v1027_v0  ;;  %v857_v16 = vmul.f32 %v856_v14, %v856_v14  ;;  %v3165_v49 = vld [vmem:[%s4024_s8 + $0x4] ss:$16 sps:$4 sm:$0xff]   ;;  %v3170_v51 = vld [vmem:[%s4024_s8] ss:$16 sps:$4 sm:$0xff]  }
 0x11d   : > { %v982_v6 = vrot.slane %v981_v2, 1  ;;  %v976_v7 = vrot.slane %v975_v3, 1  ;;  %2796 = vmatprep.subr.bf16.mxu1 %v3165_v49  ;;  %v3175_v53 = vld [vmem:[%s4024_s8 + $0x28] ss:$16 sps:$4 sm:$0xff]   ;;  %v3176_v55 = vld [vmem:[%s4024_s8 + $0x20] ss:$16 sps:$4 sm:$0xff]  }
 0x11e   : > { %v971_v4 = vadd.f32 %v970_v59, %v969_v52  ;;  %v1031_v8 = vsel %vm1030_vm4, %v965_v1, %v1029_v5  ;;  %858 = vadd.xlane.f32.xlu1 %v857_v16  ;;  %v3173_v52 = vld [vmem:[%s4024_s8 + $0x2c] ss:$16 sps:$4 sm:$0xff]   ;;  %2798 = vmatpush1.bf16.msra.mxu1 %v3170_v51  ;;  %v3177_v56 = vld [vmem:[%s4024_s8 + $0x44] ss:$16 sps:$4 sm:$0xff]   ;;  %v3182_v59 = vld [vmem:[%s4024_s8 + $0x40] ss:$16 sps:$4 sm:$0xff]  }
 0x11f   : > { %v977_v9 = vadd.f32 %v976_v7, %v975_v3  ;;  %v983_v10 = vadd.f32 %v982_v6, %v981_v2  ;;  %v3183_v60 = vld [vmem:[%s4024_s8 + $0x64] ss:$16 sps:$4 sm:$0xff]   ;;  %v3185_v61 = vld [vmem:[%s4024_s8 + $0x6c] ss:$16 sps:$4 sm:$0xff]   ;;  %v3187_v62 = vld [vmem:[%s4024_s8 + $0x68] ss:$16 sps:$4 sm:$0xff]  }
 0x120   : > { %v1033_v11 = vsel %vm1032_vm5, %v971_v4, %v1031_v8  ;;  %v3188_v63 = vld [vmem:[%s4024_s8 + $0x60] ss:$16 sps:$4 sm:$0xff]   ;;  %v3189_v0 = vld [vmem:[%s4024_s8 + $0x84] ss:$16 sps:$4 sm:$0xff]   ;;  %v3191_v1 = vld [vmem:[%s4024_s8 + $0x8c] ss:$16 sps:$4 sm:$0xff]  }
 0x121   : > { %v1035_v12 = vsel %vm1034_vm6, %v977_v9, %v1033_v11  ;;  %v3193_v2 = vld [vmem:[%s4024_s8 + $0x88] ss:$16 sps:$4 sm:$0xff]   ;;  %v3194_v3 = vld [vmem:[%s4024_s8 + $0x80] ss:$16 sps:$4 sm:$0xff]   ;;  %v3195_v4 = vld [vmem:[%s4024_s8 + $0xa4] ss:$16 sps:$4 sm:$0xff]  }
 0x122   : > { %v1037_v13 = vsel %vm1036_vm7, %v983_v10, %v1035_v12  ;;  %v3197_v5 = vld [vmem:[%s4024_s8 + $0xac] ss:$16 sps:$4 sm:$0xff]   ;;  %v3199_v6 = vld [vmem:[%s4024_s8 + $0xa8] ss:$16 sps:$4 sm:$0xff]   ;;  %v3200_v7 = vld [vmem:[%s4024_s8 + $0xa0] ss:$16 sps:$4 sm:$0xff]  }
 0x123   : > { %2651 = vmatmul.mubr.f32.vlgmr.msra.gmra.mrb[0].mxu0 %v1037_v13  ;;  %v3201_v8 = vld [vmem:[%s4024_s8 + $0xc4] ss:$16 sps:$4 sm:$0xff]   ;;  %v3203_v9 = vld [vmem:[%s4024_s8 + $0xcc] ss:$16 sps:$4 sm:$0xff]   ;;  %v3205_v10 = vld [vmem:[%s4024_s8 + $0xc8] ss:$16 sps:$4 sm:$0xff]  }
 0x124   : > { %2685 = vmatprep.mubr.msk.f32.mxu0 %vm3339_vm0, %v3340_v54  ;;  %2749 = vmatpush3.bf16.msra.mxu0 %v2379_v15  ;;  %v3206_v11 = vld [vmem:[%s4024_s8 + $0xc0] ss:$16 sps:$4 sm:$0xff]   ;;  %v3207_v12 = vld [vmem:[%s4024_s8 + $0xe4] ss:$16 sps:$4 sm:$0xff]   ;;  %v3209_v13 = vld [vmem:[%s4024_s8 + $0xec] ss:$16 sps:$4 sm:$0xff]  }
 0x125   : > { %2750 = vmatprep.subr.bf16.mxu0 %v3338_v29  ;;  %v3212_v15 = vld [vmem:[%s4024_s8 + $0xe0] ss:$16 sps:$4 sm:$0xff]   ;;  %v3213_v16 = vld [vmem:[%s4026_s10 + $0x4] ss:$8 sps:$4 sm:$0xff]   ;;  %v3246_v51 = vld [vmem:[%s4026_s10 + $0xb4] ss:$8 sps:$4 sm:$0xff]  }
 0x126   : > { %v3242_v49 = vld [vmem:[%s4026_s10 + $0x90] ss:$8 sps:$4 sm:$0xff]  }
 0x128   : > { %2752 = vmatpush3.bf16.msra.mxu0 %v2488_v17 }
 0x129   : > { %2753 = vmatprep.subr.bf16.mxu0 %v3338_v29 }
 0x12c   : > { %2755 = vmatpush3.bf16.msra.mxu0 %v2489_v18 }
 0x12d   : > { %2756 = vmatprep.subr.bf16.mxu0 %v3338_v29 }
 0x130   : > { %2758 = vmatpush3.bf16.msra.mxu0 %v2490_v19 }
 0x131   : > { %2759 = vmatprep.subr.bf16.mxu0 %v3338_v29 }
 0x134   : > { %2761 = vmatpush3.bf16.msra.mxu0 %v2491_v20  ;;  %v2306_v20 = vld [vmem:[%s4023_s7] ss:$0 sm:$0xff] }
 0x135   : > { %2762 = vmatprep.subr.bf16.mxu0 %v3338_v29 }
 0x138   : > { %2764 = vmatpush3.bf16.msra.mxu0 %v2492_v24  ;;  %v3215_v24 = vld [vmem:[%s4026_s10] ss:$8 sps:$4 sm:$0xff]  }
 0x139   : > { %2765 = vmatprep.subr.bf16.mxu0 %v3338_v29 }
 0x13c   : > { %2767 = vmatpush3.bf16.msra.mxu0 %v2493_v25 }
 0x13d   : > { %2768 = vmatprep.subr.bf16.mxu0 %v3338_v29 }
 0x140   : > { %2770 = vmatpush3.bf16.msra.mxu0 %v2494_v26  ;;  %v3216_v26 = vld [vmem:[%s4026_s10 + $0x14] ss:$8 sps:$4 sm:$0xff]  }
 0x141   : > { %2771 = vmatprep.subr.bf16.mxu0 %v3338_v29 }
 0x1ab   : > { %v859_v27 = vpop.xlane.xlu1 %858 }
 0x1ac   : > { %v860_v28 = vadd.f32 1e-12, %v859_v27  ;;  %v3218_v27 = vld [vmem:[%s4026_s10 + $0x10] ss:$8 sps:$4 sm:$0xff]  }
 0x1ae   : > { %3309 = vrsqrt.f32 %v860_v28  ;;  %v3219_v28 = vld [vmem:[%s4026_s10 + $0x24] ss:$8 sps:$4 sm:$0xff]  }
 0x1b8   : > { %v3310_v30 = vpop.eup %3309 }
 0x1b9   : > { %v862_v32 = vmul.f32 %v3310_v30, %v856_v14  ;;  %v3211_v14 = vld [vmem:[%s4024_s8 + $0xe8] ss:$16 sps:$4 sm:$0xff]  }
 0x1ba   : > { %v3221_v30 = vld [vmem:[%s4026_s10 + $0x20] ss:$8 sps:$4 sm:$0xff]  }
 0x1bb   : > { %2082 = vst [vmem:[%s4031_s15] sm:$0xff] %v862_v32 }
 0x1f6   : > { %v1105_v21 = vpop.f32.mrb[0].mxu0 }
 0x1f7   : > { %v2652_v22 = vpop.f32.mrb[1].mxu0  ;;  %v1109_v23 = vmul.f32 %v1105_v21, %v1105_v21 }
 0x1f9   : > { %1110 = vadd.xlane.f32.xlu0 %v1109_v23 }
 0x286   : > { %v1111_v37 = vpop.xlane.xlu0 %1110 }
 0x287   : > { %v1112_v38 = vadd.f32 1e-12, %v1111_v37  ;;  %v3224_v37 = vld [vmem:[%s4026_s10 + $0x30] ss:$8 sps:$4 sm:$0xff]  }
 0x289   : > { %3311 = vrsqrt.f32 %v1112_v38  ;;  %v3225_v38 = vld [vmem:[%s4026_s10 + $0x44] ss:$8 sps:$4 sm:$0xff]  }
 0x293   : > { %v3312_v39 = vpop.eup %3311 }
 0x294   : > { %v1114_v40 = vmul.f32 %v3312_v39, %v1105_v21  ;;  %v3227_v39 = vld [vmem:[%s4026_s10 + $0x40] ss:$8 sps:$4 sm:$0xff]  }
 0x296   : > { %2686 = vmatmul.mubr.f32.vlgmr.msra.gmra.mrb[2].mxu0 %v1114_v40  ;;  %2083 = vst [vmem:[%s4032_s16] sm:$0xff] %v1114_v40  ;;  %v3228_v40 = vld [vmem:[%s4026_s10 + $0x54] ss:$8 sps:$4 sm:$0xff]  }
 0x297   : > { %2773 = vmatpush3.bf16.msra.mxu0 %v2347_v41  ;;  %2720 = vmatprep.mubr.msk.f32.mxu0 %vm3339_vm0, %v3340_v54  ;;  %v3230_v41 = vld [vmem:[%s4026_s10 + $0x50] ss:$8 sps:$4 sm:$0xff]  }
 0x298   : > { %2774 = vmatprep.subr.bf16.mxu0 %v3338_v29 }
 0x29b   : > { %2776 = vmatpush3.bf16.msra.mxu0 %v2481_v42  ;;  %v3231_v42 = vld [vmem:[%s4026_s10 + $0x64] ss:$8 sps:$4 sm:$0xff]  }
 0x29c   : > { %2777 = vmatprep.subr.bf16.mxu0 %v3338_v29 }
 0x29f   : > { %2779 = vmatpush3.bf16.msra.mxu0 %v2482_v43  ;;  %v3233_v43 = vld [vmem:[%s4026_s10 + $0x60] ss:$8 sps:$4 sm:$0xff]  }
 0x2a0   : > { %2780 = vmatprep.subr.bf16.mxu0 %v3338_v29 }
 0x2a3   : > { %2782 = vmatpush3.bf16.msra.mxu0 %v2483_v44  ;;  %v3234_v44 = vld [vmem:[%s4026_s10 + $0x74] ss:$8 sps:$4 sm:$0xff]  }
 0x2a4   : > { %2783 = vmatprep.subr.bf16.mxu0 %v3338_v29 }
 0x2a7   : > { %2785 = vmatpush3.bf16.msra.mxu0 %v2484_v45  ;;  %v3236_v45 = vld [vmem:[%s4026_s10 + $0x70] ss:$8 sps:$4 sm:$0xff]  }
 0x2a8   : > { %2786 = vmatprep.subr.bf16.mxu0 %v3338_v29 }
 0x2ab   : > { %2788 = vmatpush3.bf16.msra.mxu0 %v2485_v46  ;;  %v3237_v46 = vld [vmem:[%s4026_s10 + $0x84] ss:$8 sps:$4 sm:$0xff]  }
 0x2ac   : > { %2789 = vmatprep.subr.bf16.mxu0 %v3338_v29 }
 0x2af   : > { %2791 = vmatpush3.bf16.msra.mxu0 %v2486_v47  ;;  %v3239_v47 = vld [vmem:[%s4026_s10 + $0x80] ss:$8 sps:$4 sm:$0xff]  }
 0x2b0   : > { %2792 = vmatprep.subr.bf16.mxu0 %v3338_v29  ;;  %v3169_v29 = vld [vmem:[%s4024_s8 + $0x8] ss:$16 sps:$4 sm:$0xff]  }
 0x2b3   : > { %2794 = vmatpush3.bf16.msra.mxu0 %v2487_v48  ;;  %v3240_v48 = vld [vmem:[%s4026_s10 + $0x94] ss:$8 sps:$4 sm:$0xff]  }
 0x2b4   : > { %2828 = vmatprep.subr.bf16.mxu0 %v3167_v50  ;;  %v3243_v50 = vld [vmem:[%s4026_s10 + $0xa4] ss:$8 sps:$4 sm:$0xff]  }
 0x2b6   : > { %2721 = vmatmul.mubr.f32.vlgmr.msra.gmra.mrb[4].mxu0 %v862_v32  ;;  %v3222_v32 = vld [vmem:[%s4026_s10 + $0x34] ss:$8 sps:$4 sm:$0xff]  }
 0x2b7   : > { %1581 = vmatprep.mubr.f32.mxu0 %v3340_v54  ;;  %v3171_v54 = vld [vmem:[%s4024_s8 + $0x24] ss:$16 sps:$4 sm:$0xff]   ;;  %2830 = vmatpush1.bf16.msra.mxu0 %v3169_v29  ;;  %v3245_v29 = vld [vmem:[%s4026_s10 + $0xa0] ss:$8 sps:$4 sm:$0xff]  }
 0x2b8   : > { %2800 = vmatprep.subr.bf16.mxu1 %v3171_v54  ;;  %2832 = vmatprep.subr.bf16.mxu0 %v3173_v52  ;;  %v3248_v54 = vld [vmem:[%s4026_s10 + $0xb0] ss:$8 sps:$4 sm:$0xff]   ;;  %v3249_v52 = vld [vmem:[%s4026_s10 + $0xc4] ss:$8 sps:$4 sm:$0xff]  }
 0x2b9   : > { %2802 = vmatpush1.bf16.msra.mxu1 %v3176_v55  ;;  %v3252_v55 = vld [vmem:[%s4026_s10 + $0xd4] ss:$8 sps:$4 sm:$0xff]  }
 0x2ba   : > { %2804 = vmatprep.subr.bf16.mxu1 %v3177_v56  ;;  %v3254_v56 = vld [vmem:[%s4026_s10 + $0xd0] ss:$8 sps:$4 sm:$0xff]  }
 0x2bb   : > { %2834 = vmatpush1.bf16.msra.mxu0 %v3175_v53  ;;  %v3251_v53 = vld [vmem:[%s4026_s10 + $0xc0] ss:$8 sps:$4 sm:$0xff]  }
 0x2bc   : > { %2836 = vmatprep.subr.bf16.mxu0 %v3179_v57  ;;  %v3255_v57 = vld [vmem:[%s4026_s10 + $0xe4] ss:$8 sps:$4 sm:$0xff]  }
 0x2bd   : > { %2806 = vmatpush1.bf16.msra.mxu1 %v3182_v59  ;;  %v3258_v59 = vld [vmem:[%s4026_s10 + $0xf4] ss:$8 sps:$4 sm:$0xff]  }
 0x2be   : > { %2808 = vmatprep.subr.bf16.mxu1 %v3183_v60  ;;  %v3260_v60 = vld [vmem:[%s4026_s10 + $0xf0] ss:$8 sps:$4 sm:$0xff]  }
 0x2bf   : > { %2838 = vmatpush1.bf16.msra.mxu0 %v3181_v58  ;;  %v3257_v58 = vld [vmem:[%s4026_s10 + $0xe0] ss:$8 sps:$4 sm:$0xff]  }
 0x2c0   : > { %2840 = vmatprep.subr.bf16.mxu0 %v3185_v61  ;;  %v3261_v61 = vld [vmem:[%s4026_s10 + $0x104] ss:$8 sps:$4 sm:$0xff]  }
 0x2c1   : > { %2810 = vmatpush1.bf16.msra.mxu1 %v3188_v63  ;;  %v2411_v63 = vld [vmem:[%s4028_s12] sm:$0xff]  }
 0x2c2   : > { %2812 = vmatprep.subr.bf16.mxu1 %v3189_v0  ;;  %v2503_v0 = vld [vmem:[%s4028_s12 + $0x48] sm:$0xff]  }
 0x2c3   : > { %2842 = vmatpush1.bf16.msra.mxu0 %v3187_v62  ;;  %v2502_v62 = vld [vmem:[%s4028_s12 + $0x40] sm:$0xff]  }
 0x2c4   : > { %2844 = vmatprep.subr.bf16.mxu0 %v3191_v1  ;;  %v2495_v1 = vld [vmem:[%s4028_s12 + $0x8] sm:$0xff]  }
 0x2c5   : > { %2814 = vmatpush1.bf16.msra.mxu1 %v3194_v3  ;;  %v2496_v3 = vld [vmem:[%s4028_s12 + $0x10] sm:$0xff]  }
 0x2c6   : > { %2816 = vmatprep.subr.bf16.mxu1 %v3195_v4  ;;  %v2505_v4 = vld [vmem:[%s4028_s12 + $0x58] sm:$0xff]  }
 0x2c7   : > { %2846 = vmatpush1.bf16.msra.mxu0 %v3193_v2  ;;  %v2504_v2 = vld [vmem:[%s4028_s12 + $0x50] sm:$0xff]  }
 0x2c8   : > { %2848 = vmatprep.subr.bf16.mxu0 %v3197_v5  ;;  %v2497_v5 = vld [vmem:[%s4028_s12 + $0x18] sm:$0xff]  }
 0x2c9   : > { %2818 = vmatpush1.bf16.msra.mxu1 %v3200_v7  ;;  %v2498_v7 = vld [vmem:[%s4028_s12 + $0x20] sm:$0xff]  }
 0x2ca   : > { %2820 = vmatprep.subr.bf16.mxu1 %v3201_v8  ;;  %v2507_v8 = vld [vmem:[%s4028_s12 + $0x68] sm:$0xff]  }
 0x2cb   : > { %2850 = vmatpush1.bf16.msra.mxu0 %v3199_v6  ;;  %v2506_v6 = vld [vmem:[%s4028_s12 + $0x60] sm:$0xff]  }
 0x2cc   : > { %2852 = vmatprep.subr.bf16.mxu0 %v3203_v9  ;;  %v2499_v9 = vld [vmem:[%s4028_s12 + $0x28] sm:$0xff]  }
 0x2cd   : > { %2822 = vmatpush1.bf16.msra.mxu1 %v3206_v11  ;;  %v3879_v11 = vld [vmem:[%s4025_s9] sm:$0xf] }
 0x2ce   : > { %2824 = vmatprep.subr.bf16.mxu1 %v3207_v12  ;;  %v1429_v12 = vrot.slane %v3879_v11, %v3494_v34 }
 0x2cf   : > { %2854 = vmatpush1.bf16.msra.mxu0 %v3205_v10  ;;  %v2508_v10 = vld [vmem:[%s4028_s12 + $0x70] sm:$0xff]  }
 0x2d0   : > { %2856 = vmatprep.subr.bf16.mxu0 %v3209_v13  ;;  %v1433_v13 = vrot.slane %v3879_v11, %v3498_v36 }
 0x2d1   : > { %2826 = vmatpush1.bf16.msra.mxu1 %v3212_v15 }
 0x2d2   : > { %2860 = vmatprep.subr.bf16.mxu1 %v3213_v16 }
 0x2d3   : > { %2858 = vmatpush1.bf16.msra.mxu0 %v3211_v14  ;;  %v1441_v14 = vrot.slane %v3879_v11, %v895_v35  ;;  %v3266_v35 = vld [vmem:[%s4026_s10 + $0x110] ss:$8 sps:$4 sm:$0xff]  }
 0x2d4   : > { %2988 = vmatprep.subr.bf16.mxu0 %v2502_v62 }
 0x369   : > { %v1245_v17 = vpop.f32.mrb[2].mxu0 }
 0x36a   : > { %v2687_v18 = vpop.f32.mrb[3].mxu0 }
 0x389   : > { %v1315_v19 = vpop.f32.mrb[4].mxu0 }
 0x38a   : > { %v1316_v21 = vadd.f32 %v1315_v19, %v1245_v17  ;;  %v2722_v22 = vpop.f32.mrb[5].mxu0 }
 0x38c   : > { %v1326_v23 = vadd.f32 %v2306_v20, %v1316_v21 }
 0x38e   : > { %v1327_v25 = vmax.f32 %v1326_v23, 0.0  ;;  %v3263_v23 = vld [vmem:[%s4026_s10 + $0x100] ss:$8 sps:$4 sm:$0xff]  }
 0x390   : > { %2084 = vst [vmem:[%s4033_s17] sm:$0xff] %v1327_v25  ;;  %1511 = vmatmul.mubr.f32.vlgmr.msra.gmra.mrb[0].mxu1 %v1327_v25  ;;  %1582 = vmatmul.mubr.f32.vlgmr.msra.gmra.mrb[6].mxu0 %v1327_v25  ;;  %v3264_v25 = vld [vmem:[%s4026_s10 + $0x114] ss:$8 sps:$4 sm:$0xff]  }
 0x391   : > { %2862 = vmatpush1.bf16.msra.mxu1 %v3215_v24  ;;  %2990 = vmatpush3.bf16.msra.mxu0 %v2411_v63  ;;  %v2501_v63 = vld [vmem:[%s4028_s12 + $0x38] sm:$0xff]  }
 0x392   : > { %2864 = vmatprep.subr.bf16.mxu1 %v3216_v26  ;;  %2992 = vmatprep.subr.bf16.mxu0 %v2503_v0  ;;  %v1784_v0 = vld [vmem:[%s4027_s11] sm:$0x3] }
 0x395   : > { %2866 = vmatpush1.bf16.msra.mxu1 %v3218_v27  ;;  %2994 = vmatpush3.bf16.msra.mxu0 %v2495_v1  ;;  %v3267_v27 = vld [vmem:[%s4026_s10 + $0x124] ss:$8 sps:$4 sm:$0xff]   ;;  %v1789_v1 = vrot.slane %v1784_v0, %v3494_v34 }
 0x396   : > { %2868 = vmatprep.subr.bf16.mxu1 %v3219_v28  ;;  %2996 = vmatprep.subr.bf16.mxu0 %v2504_v2  ;;  %v3269_v28 = vld [vmem:[%s4026_s10 + $0x120] ss:$8 sps:$4 sm:$0xff]   ;;  %v1793_v2 = vrot.slane %v1784_v0, %v3498_v36 }
 0x399   : > { %2870 = vmatpush1.bf16.msra.mxu1 %v3221_v30  ;;  %2998 = vmatpush3.bf16.msra.mxu0 %v2496_v3  ;;  %v3270_v30 = vld [vmem:[%s4026_s10 + $0x134] ss:$8 sps:$4 sm:$0xff]  }
 0x39a   : > { %2872 = vmatprep.subr.bf16.mxu1 %v3222_v32  ;;  %3000 = vmatprep.subr.bf16.mxu0 %v2505_v4  ;;  %v3272_v32 = vld [vmem:[%s4026_s10 + $0x130] ss:$8 sps:$4 sm:$0xff]  }
 0x39d   : > { %2874 = vmatpush1.bf16.msra.mxu1 %v3224_v37  ;;  %3002 = vmatpush3.bf16.msra.mxu0 %v2497_v5  ;;  %v3273_v37 = vld [vmem:[%s4026_s10 + $0x144] ss:$8 sps:$4 sm:$0xff]  }
 0x39e   : > { %2876 = vmatprep.subr.bf16.mxu1 %v3225_v38  ;;  %3004 = vmatprep.subr.bf16.mxu0 %v2506_v6  ;;  %v3275_v38 = vld [vmem:[%s4026_s10 + $0x140] ss:$8 sps:$4 sm:$0xff]  }
 0x3a1   : > { %2878 = vmatpush1.bf16.msra.mxu1 %v3227_v39  ;;  %3006 = vmatpush3.bf16.msra.mxu0 %v2498_v7  ;;  %v3276_v39 = vld [vmem:[%s4026_s10 + $0x154] ss:$8 sps:$4 sm:$0xff]  }
 0x3a2   : > { %2880 = vmatprep.subr.bf16.mxu1 %v3228_v40  ;;  %3008 = vmatprep.subr.bf16.mxu0 %v2507_v8  ;;  %v3278_v40 = vld [vmem:[%s4026_s10 + $0x150] ss:$8 sps:$4 sm:$0xff]  }
 0x3a5   : > { %2882 = vmatpush1.bf16.msra.mxu1 %v3230_v41  ;;  %3010 = vmatpush3.bf16.msra.mxu0 %v2499_v9  ;;  %v3279_v41 = vld [vmem:[%s4026_s10 + $0x164] ss:$8 sps:$4 sm:$0xff]  }
 0x3a6   : > { %2884 = vmatprep.subr.bf16.mxu1 %v3231_v42  ;;  %3012 = vmatprep.subr.bf16.mxu0 %v2508_v10  ;;  %v3281_v42 = vld [vmem:[%s4026_s10 + $0x160] ss:$8 sps:$4 sm:$0xff]  }
 0x3a7   : > { %v2307_v10 = vld [vmem:[%s4029_s13] ss:$0 sm:$0xff] }
 0x3a9   : > { %2886 = vmatpush1.bf16.msra.mxu1 %v3233_v43  ;;  %v3282_v43 = vld [vmem:[%s4026_s10 + $0x174] ss:$8 sps:$4 sm:$0xff]   ;;  %3014 = vmatpush3.bf16.msra.mxu0 %v2500_v31 }
 0x3aa   : > { %2888 = vmatprep.subr.bf16.mxu1 %v3234_v44  ;;  %v3284_v44 = vld [vmem:[%s4026_s10 + $0x170] ss:$8 sps:$4 sm:$0xff]  }
 0x3ad   : > { %2890 = vmatpush1.bf16.msra.mxu1 %v3236_v45  ;;  %v3285_v45 = vld [vmem:[%s4026_s10 + $0x184] ss:$8 sps:$4 sm:$0xff]  }
 0x3ae   : > { %2892 = vmatprep.subr.bf16.mxu1 %v3237_v46  ;;  %v3287_v46 = vld [vmem:[%s4026_s10 + $0x180] ss:$8 sps:$4 sm:$0xff]  }
 0x3b1   : > { %2894 = vmatpush1.bf16.msra.mxu1 %v3239_v47  ;;  %v3288_v47 = vld [vmem:[%s4026_s10 + $0x194] ss:$8 sps:$4 sm:$0xff]  }
 0x3b2   : > { %2896 = vmatprep.subr.bf16.mxu1 %v3240_v48  ;;  %v3290_v48 = vld [vmem:[%s4026_s10 + $0x190] ss:$8 sps:$4 sm:$0xff]  }
 0x3b5   : > { %2898 = vmatpush1.bf16.msra.mxu1 %v3242_v49  ;;  %v3291_v49 = vld [vmem:[%s4026_s10 + $0x1a4] ss:$8 sps:$4 sm:$0xff]  }
 0x3b6   : > { %2900 = vmatprep.subr.bf16.mxu1 %v3243_v50  ;;  %v3293_v50 = vld [vmem:[%s4026_s10 + $0x1a0] ss:$8 sps:$4 sm:$0xff]  }
 0x3b9   : > { %2902 = vmatpush1.bf16.msra.mxu1 %v3245_v29  ;;  %v3294_v29 = vld [vmem:[%s4026_s10 + $0x1b4] ss:$8 sps:$4 sm:$0xff]  }
 0x3ba   : > { %2904 = vmatprep.subr.bf16.mxu1 %v3246_v51  ;;  %v3296_v51 = vld [vmem:[%s4026_s10 + $0x1b0] ss:$8 sps:$4 sm:$0xff]  }
 0x3bd   : > { %2906 = vmatpush1.bf16.msra.mxu1 %v3248_v54  ;;  %v3297_v54 = vld [vmem:[%s4026_s10 + $0x1c4] ss:$8 sps:$4 sm:$0xff]  }
 0x3be   : > { %2908 = vmatprep.subr.bf16.mxu1 %v3249_v52  ;;  %v3299_v52 = vld [vmem:[%s4026_s10 + $0x1c0] ss:$8 sps:$4 sm:$0xff]  }
 0x3c1   : > { %2910 = vmatpush1.bf16.msra.mxu1 %v3251_v53  ;;  %v3300_v53 = vld [vmem:[%s4026_s10 + $0x1d4] ss:$8 sps:$4 sm:$0xff]  }
 0x3c2   : > { %2912 = vmatprep.subr.bf16.mxu1 %v3252_v55  ;;  %v3302_v55 = vld [vmem:[%s4026_s10 + $0x1d0] ss:$8 sps:$4 sm:$0xff]  }
 0x3c5   : > { %2914 = vmatpush1.bf16.msra.mxu1 %v3254_v56  ;;  %v3303_v56 = vld [vmem:[%s4026_s10 + $0x1e4] ss:$8 sps:$4 sm:$0xff]  }
 0x3c6   : > { %2916 = vmatprep.subr.bf16.mxu1 %v3255_v57  ;;  %v3305_v57 = vld [vmem:[%s4026_s10 + $0x1e0] ss:$8 sps:$4 sm:$0xff]  }
 0x3c9   : > { %2918 = vmatpush1.bf16.msra.mxu1 %v3257_v58  ;;  %v1437_v58 = vrot.slane %v3879_v11, %v888_v33  ;;  %v2509_v33 = vld [vmem:[%s4028_s12 + $0x78] sm:$0xff]  }
 0x3ca   : > { %2920 = vmatprep.subr.bf16.mxu1 %v3258_v59  ;;  %v3306_v59 = vld [vmem:[%s4026_s10 + $0x1f4] ss:$8 sps:$4 sm:$0xff]   ;;  %3016 = vmatprep.subr.bf16.mxu0 %v2509_v33 }
 0x3cb   : > { %3018 = vmatpush3.bf16.msra.mxu0 %v2501_v63 }
 0x3cd   : > { %2922 = vmatpush1.bf16.msra.mxu1 %v3260_v60  ;;  %v3308_v60 = vld [vmem:[%s4026_s10 + $0x1f0] ss:$8 sps:$4 sm:$0xff]  }
 0x3ce   : > { %2924 = vmatprep.subr.bf16.mxu1 %v3261_v61 }
 0x463   : > { %v1512_v15 = vpop.f32.mrb[0].mxu1  ;;  %v3888_v16 = vpop.f32.mrb[6].mxu0 }
 0x464   : > { %v1513_v17 = vadd.f32 %v1512_v15, %v1429_v12  ;;  %v1514_v18 = vpop.f32.mrb[1].mxu1  ;;  %v1585_v19 = vpop.f32.mrb[7].mxu0  ;;  %v1584_v61 = vadd.f32 %v3888_v16, %v1437_v58 }
 0x465   : > { %v1515_v20 = vadd.f32 %v1514_v18, %v1433_v13  ;;  %v1586_v21 = vadd.f32 %v1585_v19, %v1441_v14 }
 0x466   : > { %v1588_v24 = vmax.f32 %v1513_v17, 0.0  ;;  %v1590_v62 = vmax.f32 %v1584_v61, 0.0 }
 0x467   : > { %v1589_v22 = vmax.f32 %v1515_v20, 0.0  ;;  %v1591_v26 = vmax.f32 %v1586_v21, 0.0 }
 0x469   : > { %1860 = vmatprep.mubr.f32.mxu1 %v1589_v22 }
 0x46a   : > { %1861 = vmatmul.mubr.f32.vlgmr.msra.gmra.mrb[2].mxu1 %v1588_v24 }
 0x46b   : > { %2926 = vmatpush1.bf16.msra.mxu1 %v3263_v23  ;;  %1931 = vmatprep.mubr.f32.mxu1 %v1591_v26 }
 0x46c   : > { %2928 = vmatprep.subr.bf16.mxu1 %v3264_v25 }
 0x46f   : > { %2930 = vmatpush1.bf16.msra.mxu1 %v3266_v35 }
 0x470   : > { %2932 = vmatprep.subr.bf16.mxu1 %v3267_v27 }
 0x473   : > { %2934 = vmatpush1.bf16.msra.mxu1 %v3269_v28 }
 0x474   : > { %2936 = vmatprep.subr.bf16.mxu1 %v3270_v30 }
 0x477   : > { %2938 = vmatpush1.bf16.msra.mxu1 %v3272_v32 }
 0x478   : > { %2940 = vmatprep.subr.bf16.mxu1 %v3273_v37 }
 0x47b   : > { %2942 = vmatpush1.bf16.msra.mxu1 %v3275_v38 }
 0x47c   : > { %2944 = vmatprep.subr.bf16.mxu1 %v3276_v39 }
 0x47f   : > { %2946 = vmatpush1.bf16.msra.mxu1 %v3278_v40 }
 0x480   : > { %2948 = vmatprep.subr.bf16.mxu1 %v3279_v41 }
 0x483   : > { %2950 = vmatpush1.bf16.msra.mxu1 %v3281_v42 }
 0x484   : > { %2952 = vmatprep.subr.bf16.mxu1 %v3282_v43 }
 0x487   : > { %2954 = vmatpush1.bf16.msra.mxu1 %v3284_v44 }
 0x488   : > { %2956 = vmatprep.subr.bf16.mxu1 %v3285_v45 }
 0x48b   : > { %2958 = vmatpush1.bf16.msra.mxu1 %v3287_v46 }
 0x48c   : > { %2960 = vmatprep.subr.bf16.mxu1 %v3288_v47 }
 0x48f   : > { %2962 = vmatpush1.bf16.msra.mxu1 %v3290_v48 }
 0x490   : > { %2964 = vmatprep.subr.bf16.mxu1 %v3291_v49 }
 0x493   : > { %2966 = vmatpush1.bf16.msra.mxu1 %v3293_v50 }
 0x494   : > { %2968 = vmatprep.subr.bf16.mxu1 %v3294_v29 }
 0x497   : > { %2970 = vmatpush1.bf16.msra.mxu1 %v3296_v51 }
 0x498   : > { %2972 = vmatprep.subr.bf16.mxu1 %v3297_v54 }
 0x49b   : > { %2974 = vmatpush1.bf16.msra.mxu1 %v3299_v52 }
 0x49c   : > { %2976 = vmatprep.subr.bf16.mxu1 %v3300_v53 }
 0x49f   : > { %2978 = vmatpush1.bf16.msra.mxu1 %v3302_v55 }
 0x4a0   : > { %2980 = vmatprep.subr.bf16.mxu1 %v3303_v56 }
 0x4a3   : > { %2982 = vmatpush1.bf16.msra.mxu1 %v3305_v57 }
 0x4a4   : > { %2984 = vmatprep.subr.bf16.mxu1 %v3306_v59 }
 0x4a7   : > { %2986 = vmatpush1.bf16.msra.mxu1 %v3308_v60 }
 0x4aa   : > { %1932 = vmatmul.mubr.f32.vlgmr.msra.gmra.mrb[2].mxu1 %v1590_v62 }
 0x57d   : > { %v1933_v3 = vpop.f32.mrb[2].mxu1 }
 0x57e   : > { %v3019_v4 = vadd.f32 %v1933_v3, %v1789_v1  ;;  %v1935_v5 = vpop.f32.mrb[3].mxu1 }
 0x57f   : > { %v3020_v6 = vadd.f32 %v1935_v5, %v1793_v2 }
 0x580   : > { %v1938_v8 = vmax.f32 %v3019_v4, 0.0 }
 0x581   : > { %v1939_v7 = vmax.f32 %v3020_v6, 0.0 }
 0x583   : > { %2075 = vmatprep.mubr.f32.mxu0 %v1939_v7 }
 0x584   : > { %2076 = vmatmul.mubr.f32.vlgmr.msra.gmra.mrb[8].mxu0 %v1938_v8 }
 0x657   : > { %v2615_v9 = vpop.f32.mrb[8].mxu0 }
 0x658   : > { %v2616_v11 = vpop.f32.mrb[9].mxu0 }
 0x659   : > { %v2617_v12 = vadd.f32 %v2616_v11, %v2615_v9 }
 0x65b   : > { %v2078_v13 = vadd.f32 %v2617_v12, %v2307_v10 }
 0x65d   : > { %2081 = vst [vmem:[%s4030_s14] sm:$0xff] %v2078_v13 }
 0x65e PF: > { %s28_s26 = sadd.s32 1, %s3335_s26   ;;  %s4041_s24 = smov %s3331_s25 }
 0x65f   : > { %p25_p8 = scmp.ge.s32.totalorder %s28_s26, 5   ;;  %s4042_s25 = smov %s4044_s27 }
 0x661   :  { %27 = sbr.rel (!%p25_p8) target bundleno = 4 (0x4), region = 159 }

</bundles_post_ra>
